<compile_context>
chip_gen: v5e
topology: v5e:2x2
jax: 0.10.0
libtpu: 0.0.40
codegen_flags: <defaults>
</compile_context>

<pallas_src>
import jax
import jax.numpy as jnp
from jax.experimental import pallas as pl
from jax.experimental.pallas import tpu as pltpu


def vit_embed_kernel(patches_ref, w_ref, pos_ref, out_ref):
    # patches_ref: (1, N+1, K) bf16   (row 0 is zeros -> cls slot)
    # w_ref      : (K, TD)     bf16   (resident across the inner batch axis)
    # pos_ref    : (N+1, TD)   f32    (row 0 = cls + pos[0]; rows 1.. = pos[1:] + bias)
    # out_ref    : (1, N+1, TD) f32
    proj = jnp.dot(patches_ref[0], w_ref[...],
                   preferred_element_type=jnp.float32)          # MXU, f32 accumulation
    out_ref[0] = (proj + pos_ref[...]).astype(out_ref.dtype)


def _pick_d_tiles(B, n_rows, K, D, vmem_budget=12 * 1024 * 1024):
    """Number of tiles along D (each D//nd, a multiple of 128 when nd > 1)."""
    def vmem_bytes(nd):
        td = D // nd
        return (2 * n_rows * K * 2       # patches block (bf16, double-buffered)
                + 2 * K * td * 2         # weight block  (bf16)
                + 2 * n_rows * td * 4    # pos block     (f32)
                + 2 * n_rows * td * 4)   # out block     (f32)

    candidates = [1] + [nd for nd in range(2, max(2, D // 128 + 1))
                        if D % nd == 0 and (D // nd) % 128 == 0]
    nd = candidates[-1]
    for c in candidates:                 # smallest nd that fits the VMEM budget
        if vmem_bytes(c) <= vmem_budget:
            nd = c
            break
    if B * nd < 2:                       # v7x: ensure >= 2 grid steps when B == 1
        for c in candidates:
            if c >= 2 and vmem_bytes(c) <= vmem_budget:
                nd = c
                break
    return nd


def vit_embeddings(x_nchw, w_conv, b_conv, cls_token, pos_emb, patch_size):
    """x_nchw: (B, C, H, W) float32. Returns (B, N+1, D) float32."""
    B, C, H, W = x_nchw.shape
    P = patch_size
    D = w_conv.shape[0]
    nh, nw = H // P, W // P
    N = nh * nw
    K = C * P * P

    # --- plain-JAX glue (patch extraction; cast to bf16 BEFORE the transpose) ---
    x_bf16 = x_nchw.astype(jnp.bfloat16)
    patches = x_bf16.reshape(B, C, nh, P, nw, P)
    patches = jnp.transpose(patches, (0, 2, 4, 1, 3, 5)).reshape(B, N, K)
    # Prepend one zero "cls slot" row: the matmul then emits row 0 == 0 and the whole
    # cls/pos/bias correction lands in a single dense in-kernel add (no concat later).
    patches_ext = jnp.pad(patches, ((0, 0), (1, 0), (0, 0)))            # (B, N+1, K) bf16

    # Conv2d weight (D, C, P, P) -> (K, D), bf16 for the MXU.
    w_proj = w_conv.reshape(D, K).T.astype(jnp.bfloat16)

    pos = pos_emb.reshape(N + 1, D).astype(jnp.float32)
    pos_full = jnp.concatenate(
        [pos[0:1] + cls_token.reshape(1, D).astype(jnp.float32),        # cls row
         pos[1:] + b_conv[None, :].astype(jnp.float32)],                # patch rows
        axis=0)                                                         # (N+1, D) f32

    nd = _pick_d_tiles(B, N + 1, K, D)
    TD = D // nd
    grid = (nd, B)   # batch innermost -> weight/pos block indices constant step-to-step

    out = pl.pallas_call(
        vit_embed_kernel,
        out_shape=jax.ShapeDtypeStruct((B, N + 1, D), jnp.float32),
        grid_spec=pltpu.PrefetchScalarGridSpec(
            num_scalar_prefetch=0,
            grid=grid,
            in_specs=[
                pl.BlockSpec((1, N + 1, K), lambda d, b: (b, 0, 0)),
                pl.BlockSpec((K, TD), lambda d, b: (0, d)),
                pl.BlockSpec((N + 1, TD), lambda d, b: (0, d)),
            ],
            out_specs=pl.BlockSpec((1, N + 1, TD), lambda d, b: (b, 0, d)),
        ),
        compiler_params=pltpu.CompilerParams(
            dimension_semantics=("parallel", "parallel"),
        ),
    )(patches_ext, w_proj, pos_full)
    # TODO(synk): nn.Dropout(hidden_dropout_prob=0.0) is identity; omitted.
    return out


def vit_embeddings_ref(x_nchw, w_conv, b_conv, cls_token, pos_emb, patch_size):
    """Pure-JAX f32 reference mirroring the PyTorch forward."""
    B, C, H, W = x_nchw.shape
    P = patch_size
    D = w_conv.shape[0]
    nh, nw = H // P, W // P
    N = nh * nw
    K = C * P * P
    patches = x_nchw.reshape(B, C, nh, P, nw, P)
    patches = jnp.transpose(patches, (0, 2, 4, 1, 3, 5)).reshape(B, N, K)
    proj = patches @ w_conv.reshape(D, K).T + b_conv[None, None, :]     # (B, N, D)
    cls = jnp.broadcast_to(cls_token.reshape(1, 1, D), (B, 1, D))
    emb = jnp.concatenate([cls, proj], axis=1) + pos_emb.reshape(1, N + 1, D)
    return emb


if __name__ == "__main__":
    # Small config consistent with the module: batch=2, channels=4,
    # image=16, patch=4 -> num_patches=16, hidden=32.
    B, C, IMG, P, D = 2, 4, 16, 4, 32
    N = (IMG // P) ** 2

    key = jax.random.PRNGKey(0)
    k_x, k_w, k_b, k_cls, k_pos = jax.random.split(key, 5)

    x = jax.random.normal(k_x, (B, C, IMG, IMG), dtype=jnp.float32)
    w_conv = jax.random.normal(k_w, (D, C, P, P), dtype=jnp.float32) * 0.02
    b_conv = jax.random.normal(k_b, (D,), dtype=jnp.float32) * 0.02
    cls_token = jax.random.normal(k_cls, (1, 1, D), dtype=jnp.float32)
    pos_emb = jax.random.normal(k_pos, (1, N + 1, D), dtype=jnp.float32)

    out = vit_embeddings(x, w_conv, b_conv, cls_token, pos_emb, P)
    out = jax.block_until_ready(out)

    ref = vit_embeddings_ref(x, w_conv, b_conv, cls_token, pos_emb, P)
    assert out.shape == (B, N + 1, D)
    # bf16 patch/weight inputs (f32 accumulation) -> loosened tolerance vs f32 reference.
    assert jnp.allclose(out, ref, atol=2e-2, rtol=2e-2)

    print("KERNEL_OK")
</pallas_src>

<mosaic_0001>
module attributes {stable_mosaic.version = 11 : i64} {
  func.func @vit_embed_kernel(%arg0: i32, %arg1: i32, %arg2: memref<1x17x64xbf16, #tpu.memory_space<vmem>>, %arg3: memref<64x32xbf16, #tpu.memory_space<vmem>>, %arg4: memref<17x32xf32, #tpu.memory_space<vmem>>, %arg5: memref<1x17x32xf32, #tpu.memory_space<vmem>>) attributes {dimension_semantics = [#tpu.dimension_semantics<parallel>, #tpu.dimension_semantics<parallel>], iteration_bounds = array<i64: 1, 2>, scalar_prefetch = 0 : i64, scratch_operands = 0 : i64, tpu.core_type = #tpu.core_type<tc>, window_params = [{transform_indices = @transform_0, window_bounds = array<i64: 1, 17, 64>}, {transform_indices = @transform_1, window_bounds = array<i64: 64, 32>}, {transform_indices = @transform_2, window_bounds = array<i64: 17, 32>}, {transform_indices = @transform_3, window_bounds = array<i64: 1, 17, 32>}]} {
    %c0 = arith.constant 0 : index
    %c0_0 = arith.constant 0 : index
    %c0_1 = arith.constant 0 : index
    %0 = vector.load %arg2[%c0, %c0_0, %c0_1] : memref<1x17x64xbf16, #tpu.memory_space<vmem>>, vector<1x17x64xbf16>
    %1 = vector.shape_cast %0 : vector<1x17x64xbf16> to vector<17x64xbf16>
    %c0_2 = arith.constant 0 : index
    %c0_3 = arith.constant 0 : index
    %2 = vector.load %arg3[%c0_2, %c0_3] : memref<64x32xbf16, #tpu.memory_space<vmem>>, vector<64x32xbf16>
    %cst = arith.constant dense<0.000000e+00> : vector<17x32xf32>
    %3 = tpu.matmul %1, %2, %cst {dimension_numbers = #tpu.dot_dimension_numbers<[1], [0], [0], [1], [0, 0, 1, 1], [], []>} : vector<17x64xbf16>, vector<64x32xbf16>, vector<17x32xf32> -> vector<17x32xf32>
    %c0_4 = arith.constant 0 : index
    %c0_5 = arith.constant 0 : index
    %4 = vector.load %arg4[%c0_4, %c0_5] : memref<17x32xf32, #tpu.memory_space<vmem>>, vector<17x32xf32>
    %5 = arith.addf %3, %4 : vector<17x32xf32>
    %c0_6 = arith.constant 0 : index
    %c0_7 = arith.constant 0 : index
    %c0_8 = arith.constant 0 : index
    %6 = vector.load %arg5[%c0_6, %c0_7, %c0_8] : memref<1x17x32xf32, #tpu.memory_space<vmem>>, vector<1x17x32xf32>
    %7 = vector.shape_cast %6 : vector<1x17x32xf32> to vector<17x32xf32>
    %8 = vector.shape_cast %5 : vector<17x32xf32> to vector<1x17x32xf32>
    tpu.vector_store %arg5[%c0_6, %c0_7, %c0_8], %8 {strides = array<i32>} : memref<1x17x32xf32, #tpu.memory_space<vmem>>, vector<1x17x32xf32>,
    return
  }
  func.func @transform_0(%arg0: i32, %arg1: i32) -> (i32, i32, i32) {
    %c0_i32 = arith.constant 0 : i32
    %c0_i32_0 = arith.constant 0 : i32
    %c0_i32_1 = arith.constant 0 : i32
    return %arg1, %c0_i32, %c0_i32_0 : i32, i32, i32
  }
  func.func @transform_1(%arg0: i32, %arg1: i32) -> (i32, i32) {
    %c0_i32 = arith.constant 0 : i32
    %c0_i32_0 = arith.constant 0 : i32
    return %c0_i32, %arg0 : i32, i32
  }
  func.func @transform_2(%arg0: i32, %arg1: i32) -> (i32, i32) {
    %c0_i32 = arith.constant 0 : i32
    %c0_i32_0 = arith.constant 0 : i32
    return %c0_i32, %arg0 : i32, i32
  }
  func.func @transform_3(%arg0: i32, %arg1: i32) -> (i32, i32, i32) {
    %c0_i32 = arith.constant 0 : i32
    %c0_i32_0 = arith.constant 0 : i32
    return %arg1, %c0_i32, %arg0 : i32, i32, i32
  }
}

</mosaic_0001>

<bundles_post_ra>
// kernel: tpu_custom_call.1
= control target key start
LH: loop header
LB: loop body
LE: loop exit
PB: predicated region body
PF: predicated region fallthrough
CT: control target
= control target key end

     0   :  { %s522_s12 = smov 0   ;;  %s524_s13 = smov 0   ;;  %s576_s0 = inlined_call_operand.vmem [shape: bf16[2,17,64], index: 0, kind: input, shape index: {}]   ;;  %s577_s1 = inlined_call_operand.vmem [shape: bf16[64,32], index: 1, kind: input, shape index: {}]   ;;  %s578_s2 = inlined_call_operand.vmem [shape: f32[17,32], index: 2, kind: input, shape index: {}]   ;;  %s579_s3 = inlined_call_operand.vmem [shape: f32[2,17,32], index: 3, kind: output, shape index: {}]  }
   0x1   :  { %s526_s14 = smov 0  }
   0x2 LB: > { %s22_s15 = sadd.s32 1, %s496_s13  ;;  %p416_p0 = scmp.ge.s32.totalorder %s500_s14, 1  ;;  %s500_s14 = sphi %s526_s14, %s13_s14   ;;  %s496_s13 = sphi %s524_s13, %s581_s13   ;;  %s492_s12 = sphi %s522_s12, %s580_s12  }
   0x3   : > { %p23_p1 = scmp.ge.s32.totalorder %s22_s15, 2  ;;  %p169_p2 = scmp.lt.s32.totalorder %s500_s14, 3 }
   0x5   : > { %s583_s15 = smov (%p23_p1, %s22_s15), 0  ;;  %p170_p3 = pnand %p416_p0, %p169_p2 }
   0x6   : > { %p204_p4 = scmp.lt.s32.totalorder (!%p170_p3), %s492_s12, 1 }
   0x7   : > { %173 = sbr.rel (%p170_p3) target bundleno = 165 (0xa5), region = 32 }
   0xc   : > { %v447_v0 = vld [vmem:[%s577_s1 + $0x18] sm:$0xff]  ;;  %v446_v1 = vld [vmem:[%s577_s1 + $0x10] sm:$0xff]  ;;  %s585_s12 = smov (!%p204_p4, %s492_s12), 1  ;;  %v445_v2 = vld [vmem:[%s577_s1 + $0x8] sm:$0xff]  ;;  %vm272_vm0 = vcmask 523264   ;;  %vm297_vm1 = vcmask 261120  }
   0xd   : > { %283 = vmatpush.bf16.msra.mxu0 %v447_v0  ;;  %448 = vmatpush.bf16.msra.mxu1 %v447_v0  ;;  %s452_s20 = smul.u32 12, %s585_s12  ;;  %v444_v5 = vld [vmem:[%s577_s1] sm:$0xff]  ;;  %v239_v9 = vld [vmem:[%s578_s2 + $0x10] sm:$0x1]  ;;  %vm300_vm2 = vcmask 253952   ;;  %v238_v14 = vld [vmem:[%s578_s2 + $0x8] sm:$0xff] }
   0xe   : > { %s453_s28 = smul.u32 24, %s585_s12  ;;  %v237_v8 = vld [vmem:[%s578_s2] sm:$0xff] }
   0xf   : > { %s208_s25 = scalar_lea.vmem %s576_s0, %s452_s20 }
  0x10   : > { %v228_v3 = vld [vmem:[%s208_s25 + $0x8] sm:$0x1]  ;;  %v443_v6 = vld [vmem:[%s208_s25] sm:$0xff]  ;;  %s224_s8 = scalar_lea.vmem %s579_s3, %s453_s28 }
  0x11   : > { %284 = vmatpush.bf16.msra.mxu0 %v446_v1  ;;  %449 = vmatpush.bf16.msra.mxu1 %v446_v1  ;;  %v245_v4 = vunpack.c.l.b16 %v228_v3 }
  0x13   : > { %v247_v7 = vpack.c.b16 %v245_v4, %v245_v4 }
  0x15   : > { %285 = vmatpush.bf16.msra.mxu0 %v445_v2  ;;  %450 = vmatpush.bf16.msra.mxu1 %v445_v2 }
  0x19   : > { %286 = vmatpush.bf16.msra.mxu0 %v444_v5  ;;  %451 = vmatpush.bf16.msra.mxu1 %v444_v5 }
  0x1c   : > { %439 = vmatmul.msk.bf16.vlgmr.msra.gmra.mxu0 %vm272_vm0, %v443_v6  ;;  %440 = vmatmul.msk.bf16.vlgmr.msra.gmra.mxu1 %vm272_vm0, %v247_v7 }
  0x99   : > { %v288_v10 = vpop.f32.mrf.mxu0  ;;  %v293_v11 = vpop.f32.mrf.mxu1 }
  0x9a   : > { %v289_v12 = vadd.f32 %v288_v10, %v237_v8  ;;  %v294_v13 = vadd.f32 %v293_v11, %v239_v9 }
  0x9c   : > { %298 = vst.msk [vmem:[%s224_s8] sm:$0xff] %vm297_vm1, %v289_v12 }
  0x9d   : > { %301 = vst.msk [vmem:[%s224_s8 + $0x10] sm:$0x1] %vm300_vm2, %v294_v13 }
  0xa1   : > { %v290_v15 = vpop.f32.mrf.mxu0  ;;  %v295_v16 = vpop.f32.mrf.mxu1 }
  0xa2   : > { %v291_v17 = vadd.f32 %v290_v15, %v238_v14 }
  0xa4   : > { %299 = vst.msk [vmem:[%s224_s8 + $0x8] sm:$0xff] %vm297_vm1, %v291_v17 }
  0xa5 PF: > { %s13_s14 = sadd.s32 1, %s500_s14   ;;  %s580_s12 = smov %s496_s13 }
  0xa6   : > { %p10_p5 = scmp.ge.s32.totalorder %s13_s14, 4   ;;  %s581_s13 = smov %s583_s15 }
  0xa8   :  { %12 = sbr.rel (!%p10_p5) target bundleno = 2 (0x2), region = 68 }

</bundles_post_ra>
